<compile_context>
chip_gen: v7x
topology: tpu7x:2x2x1
jax: 0.10.0
libtpu: 0.0.40
codegen_flags: <defaults>
</compile_context>

<pallas_src>
import jax
import jax.numpy as jnp
from jax.experimental import pallas as pl
from jax.experimental.pallas import tpu as pltpu

_LANE = 128
_SUBLANE = 8


# ---------------------------------------------------------------------------
# Kernel: one batch tile per grid step. bf16 MXU matmuls with f32 accumulation,
# ReLU on the VPU, tanh on the EUP, lane-dense (TBP, PACK*out_cols) output store.
# ---------------------------------------------------------------------------
def _policy_kernel(x_ref, w1_ref, b1_ref, w2_ref, b2_ref, w3_ref, b3_ref, o_ref):
    x = x_ref[...].astype(jnp.bfloat16)
    h1 = jnp.dot(x, w1_ref[...], preferred_element_type=jnp.float32) + b1_ref[...]
    h1 = jnp.maximum(h1, 0.0).astype(jnp.bfloat16)
    h2 = jnp.dot(h1, w2_ref[...], preferred_element_type=jnp.float32) + b2_ref[...]
    h2 = jnp.maximum(h2, 0.0).astype(jnp.bfloat16)
    y = jnp.dot(h2, w3_ref[...], preferred_element_type=jnp.float32) + b3_ref[...]
    o_ref[...] = jnp.tanh(y)


# ---------------------------------------------------------------------------
# Layout helpers
# ---------------------------------------------------------------------------
def _next_pow2(n):
    p = 1
    while p < n:
        p *= 2
    return p


def _choose_pack(output_action, input_state, h1, h2, weight_budget_bytes=6 << 20):
    """Pick (pack, out_cols): pack logical rows per 128-lane output row, and the
    (power-of-two) padded output width.  pack*out_cols == 128 whenever possible."""
    if output_action > _LANE:
        # Fallback: no row packing, lane-pad the output width.
        return 1, -(-output_action // _LANE) * _LANE
    out_cols = _next_pow2(output_action)
    pack = _LANE // out_cols
    w_elems = input_state * h1 + h1 * h2 + h2 * out_cols
    # Block-diagonal expansion multiplies weight bytes by pack^2; keep it modest.
    while pack > 1 and pack * pack * w_elems * 2 > weight_budget_bytes:
        pack //= 2
    return pack, out_cols


def _pick_packed_tile(bp, in_row_bytes, out_row_bytes, weight_bytes):
    """Tile (in packed rows) for the batch grid axis."""
    per_row = 2 * (in_row_bytes + out_row_bytes)        # double-buffered in + out blocks
    budget = (12 << 20) - weight_bytes                    # safe under v5e's 16 MiB default scoped VMEM
    cap = max(_SUBLANE, min(2048, (budget // per_row) // _SUBLANE * _SUBLANE))
    if bp < 2 * _SUBLANE:
        return bp                                         # tiny batch: one full block
    half = max(_SUBLANE, (bp // 2) // _SUBLANE * _SUBLANE)  # >= 2 grid steps -> both v7x TCs busy
    return min(cap, half)


# ---------------------------------------------------------------------------
# Parameters
# ---------------------------------------------------------------------------
def init_params(key, input_state, hidden_sizes, output_action):
    """PyTorch nn.Linear-style init U(-1/sqrt(fan_in), 1/sqrt(fan_in)).
    Returns logical [(w, b), ...] with w: (fan_in, fan_out) f32, b: (fan_out,) f32."""
    dims = [input_state, hidden_sizes[0], hidden_sizes[1], output_action]
    params = []
    for fan_in, fan_out in zip(dims[:-1], dims[1:]):
        key, kw, kb = jax.random.split(key, 3)
        bound = 1.0 / float(fan_in) ** 0.5
        w = jax.random.uniform(kw, (fan_in, fan_out), jnp.float32, -bound, bound)
        b = jax.random.uniform(kb, (fan_out,), jnp.float32, -bound, bound)
        params.append((w, b))
    return params


def pack_params(logical_params, output_action):
    """Pack logical params for the kernel (do this ONCE, e.g. after checkpoint load).

    Invariants the kernel relies on (enforced here):
      - last layer's weight/bias are zero-padded to out_cols columns (tanh(0)=0, dropped
        by the wrapper's free reshape/slice);
      - each weight is expanded to a block-diagonal [pack*fin, pack*fout] bf16 matrix
        (kron(I_pack, W)) so each logical row's math stays independent;
      - each bias is tiled to [1, pack*fout] f32.
    """
    (w1, b1), (w2, b2), (w3, b3) = logical_params
    s, h1 = w1.shape
    h2 = w2.shape[1]
    assert w3.shape[1] == output_action
    pack, out_cols = _choose_pack(output_action, s, h1, h2)
    if out_cols != output_action:
        w3 = jnp.pad(w3, ((0, 0), (0, out_cols - output_action)))
        b3 = jnp.pad(b3, ((0, out_cols - output_action),))

    def expand(w, b):
        wbd = jnp.kron(jnp.eye(pack, dtype=w.dtype), w).astype(jnp.bfloat16)
        bt = jnp.tile(b.astype(jnp.float32), pack)[None, :]
        return wbd, bt

    w1p, b1p = expand(w1, b1)
    w2p, b2p = expand(w2, b2)
    w3p, b3p = expand(w3, b3)
    meta = dict(pack=pack, out_cols=out_cols, input_state=s, output_action=output_action)
    return (w1p, b1p, w2p, b2p, w3p, b3p), meta


# ---------------------------------------------------------------------------
# Forward
# ---------------------------------------------------------------------------
def policy_forward(state, packed_params, meta):
    """state: [B, S] (f32 or bf16) -> actions: [B, output_action] f32 in [-1, 1]."""
    w1, b1, w2, b2, w3, b3 = packed_params
    pack = meta["pack"]
    out_cols = meta["out_cols"]
    output_action = meta["output_action"]
    B, S = state.shape

    # Pad batch to a multiple of PACK (copies only for awkward batch sizes).
    B_pad = -(-B // pack) * pack
    if B_pad != B:
        state = jnp.pad(state, ((0, B_pad - B), (0, 0)))
    # Free, contiguous reshape: PACK logical rows -> one packed row.
    xp = state.reshape(B_pad // pack, pack * S)
    bp = xp.shape[0]
    in_width = pack * S
    out_width = pack * out_cols                      # == 128 when pack == 128 // out_cols

    weight_bytes = sum(int(p.size) * p.dtype.itemsize for p in packed_params)
    tbp = _pick_packed_tile(bp, in_width * xp.dtype.itemsize, out_width * 4, weight_bytes)
    grid = (pl.cdiv(bp, tbp),)                       # partial edge block handled by Pallas

    flops = 2 * bp * (in_width * w1.shape[1] + w1.shape[1] * w2.shape[1]
                      + w2.shape[1] * out_width)
    bytes_accessed = (int(xp.size) * xp.dtype.itemsize + weight_bytes + bp * out_width * 4)

    out = pl.pallas_call(
        _policy_kernel,
        out_shape=jax.ShapeDtypeStruct((bp, out_width), jnp.float32),
        grid_spec=pltpu.PrefetchScalarGridSpec(
            num_scalar_prefetch=0,
            grid=grid,
            in_specs=[
                pl.BlockSpec((tbp, in_width), lambda i: (i, 0)),   # batch-tiled activations
                pl.BlockSpec(w1.shape, lambda i: (0, 0)),          # weights/biases stay VMEM-resident
                pl.BlockSpec(b1.shape, lambda i: (0, 0)),
                pl.BlockSpec(w2.shape, lambda i: (0, 0)),
                pl.BlockSpec(b2.shape, lambda i: (0, 0)),
                pl.BlockSpec(w3.shape, lambda i: (0, 0)),
                pl.BlockSpec(b3.shape, lambda i: (0, 0)),
            ],
            out_specs=pl.BlockSpec((tbp, out_width), lambda i: (i, 0)),
        ),
        compiler_params=pltpu.CompilerParams(
            dimension_semantics=("parallel",),       # shard batch tiles across TCs (v7x)
        ),
        cost_estimate=pl.CostEstimate(
            flops=flops,
            transcendentals=bp * out_width,
            bytes_accessed=bytes_accessed,
        ),
    )(xp, w1, b1, w2, b2, w3, b3)

    # Contiguous, ~free reshape back to logical rows; slice only if padding was used.
    out = out.reshape(B_pad, out_cols)
    if B_pad != B or out_cols != output_action:
        out = out[:B, :output_action]
    return out


def policy_reference(state, logical_params):
    """Plain-JAX reference with matching numerics (bf16 matmuls, f32 accumulation)."""
    (w1, b1), (w2, b2), (w3, b3) = logical_params
    x = state.astype(jnp.bfloat16)
    h = jnp.maximum(jnp.dot(x, w1.astype(jnp.bfloat16),
                            preferred_element_type=jnp.float32) + b1, 0.0).astype(jnp.bfloat16)
    h = jnp.maximum(jnp.dot(h, w2.astype(jnp.bfloat16),
                            preferred_element_type=jnp.float32) + b2, 0.0).astype(jnp.bfloat16)
    return jnp.tanh(jnp.dot(h, w3.astype(jnp.bfloat16),
                            preferred_element_type=jnp.float32) + b3)


if __name__ == "__main__":
    # Small shapes consistent with the module: Config.hidden_sizes assumed (32, 32).
    input_state, hidden_sizes, output_action = 16, (32, 32), 8

    key = jax.random.PRNGKey(0)
    k_s, k_p, k_s2 = jax.random.split(key, 3)
    logical = init_params(k_p, input_state, hidden_sizes, output_action)
    packed, meta = pack_params(logical, output_action)

    # Main small-shape check (single-block path).
    state = jax.random.normal(k_s, (8, input_state), jnp.float32)
    out = jax.block_until_ready(policy_forward(state, packed, meta))
    ref = policy_reference(state, logical)
    assert out.shape == (8, output_action), out.shape
    assert bool(jnp.all(jnp.abs(out) <= 1.0)), "tanh range violated"
    assert jnp.allclose(out, ref, atol=2e-3, rtol=2e-3)

    # Second check exercising the tiled path: multi-step grid, batch not a multiple of PACK
    # (padding + partial edge block + row slice).
    state2 = jax.random.normal(k_s2, (300, input_state), jnp.float32)
    out2 = jax.block_until_ready(policy_forward(state2, packed, meta))
    ref2 = policy_reference(state2, logical)
    assert out2.shape == (300, output_action), out2.shape
    assert bool(jnp.all(jnp.abs(out2) <= 1.0)), "tanh range violated"
    assert jnp.allclose(out2, ref2, atol=2e-3, rtol=2e-3)

    print("KERNEL_OK")
</pallas_src>

<mosaic_0001>
module attributes {stable_mosaic.version = 11 : i64} {
  func.func @_policy_kernel(%arg0: i32, %arg1: memref<1x256xf32, #tpu.memory_space<vmem>>, %arg2: memref<256x512xbf16, #tpu.memory_space<vmem>>, %arg3: memref<1x512xf32, #tpu.memory_space<vmem>>, %arg4: memref<512x512xbf16, #tpu.memory_space<vmem>>, %arg5: memref<1x512xf32, #tpu.memory_space<vmem>>, %arg6: memref<512x128xbf16, #tpu.memory_space<vmem>>, %arg7: memref<1x128xf32, #tpu.memory_space<vmem>>, %arg8: memref<1x128xf32, #tpu.memory_space<vmem>>) attributes {dimension_semantics = [#tpu.dimension_semantics<parallel>], iteration_bounds = array<i64: 1>, scalar_prefetch = 0 : i64, scratch_operands = 0 : i64, tpu.core_type = #tpu.core_type<tc>, window_params = [{transform_indices = @transform_0, window_bounds = array<i64: 1, 256>}, {pipeline_mode = #tpu.pipeline_mode<synchronous>, transform_indices = @transform_1, window_bounds = array<i64: 256, 512>}, {pipeline_mode = #tpu.pipeline_mode<synchronous>, transform_indices = @transform_2, window_bounds = array<i64: 1, 512>}, {pipeline_mode = #tpu.pipeline_mode<synchronous>, transform_indices = @transform_3, window_bounds = array<i64: 512, 512>}, {pipeline_mode = #tpu.pipeline_mode<synchronous>, transform_indices = @transform_4, window_bounds = array<i64: 1, 512>}, {pipeline_mode = #tpu.pipeline_mode<synchronous>, transform_indices = @transform_5, window_bounds = array<i64: 512, 128>}, {pipeline_mode = #tpu.pipeline_mode<synchronous>, transform_indices = @transform_6, window_bounds = array<i64: 1, 128>}, {transform_indices = @transform_7, window_bounds = array<i64: 1, 128>}]} {
    %c0 = arith.constant 0 : index
    %c0_0 = arith.constant 0 : index
    %0 = vector.load %arg1[%c0, %c0_0] : memref<1x256xf32, #tpu.memory_space<vmem>>, vector<1x256xf32>
    %1 = arith.truncf %0 : vector<1x256xf32> to vector<1x256xbf16>
    %c0_1 = arith.constant 0 : index
    %c0_2 = arith.constant 0 : index
    %2 = vector.load %arg2[%c0_1, %c0_2] : memref<256x512xbf16, #tpu.memory_space<vmem>>, vector<256x512xbf16>
    %cst = arith.constant dense<0.000000e+00> : vector<1x512xf32>
    %3 = tpu.matmul %1, %2, %cst {dimension_numbers = #tpu.dot_dimension_numbers<[1], [0], [0], [1], [0, 0, 1, 1], [], []>} : vector<1x256xbf16>, vector<256x512xbf16>, vector<1x512xf32> -> vector<1x512xf32>
    %c0_3 = arith.constant 0 : index
    %c0_4 = arith.constant 0 : index
    %4 = vector.load %arg3[%c0_3, %c0_4] : memref<1x512xf32, #tpu.memory_space<vmem>>, vector<1x512xf32>
    %5 = arith.addf %3, %4 : vector<1x512xf32>
    %cst_5 = arith.constant 0.000000e+00 : f32
    %6 = vector.broadcast %cst_5 : f32 to vector<1x512xf32>
    %7 = arith.maximumf %5, %6 : vector<1x512xf32>
    %8 = arith.truncf %7 : vector<1x512xf32> to vector<1x512xbf16>
    %c0_6 = arith.constant 0 : index
    %c0_7 = arith.constant 0 : index
    %9 = vector.load %arg4[%c0_6, %c0_7] : memref<512x512xbf16, #tpu.memory_space<vmem>>, vector<512x512xbf16>
    %cst_8 = arith.constant dense<0.000000e+00> : vector<1x512xf32>
    %10 = tpu.matmul %8, %9, %cst_8 {dimension_numbers = #tpu.dot_dimension_numbers<[1], [0], [0], [1], [0, 0, 1, 1], [], []>} : vector<1x512xbf16>, vector<512x512xbf16>, vector<1x512xf32> -> vector<1x512xf32>
    %c0_9 = arith.constant 0 : index
    %c0_10 = arith.constant 0 : index
    %11 = vector.load %arg5[%c0_9, %c0_10] : memref<1x512xf32, #tpu.memory_space<vmem>>, vector<1x512xf32>
    %12 = arith.addf %10, %11 : vector<1x512xf32>
    %cst_11 = arith.constant 0.000000e+00 : f32
    %13 = vector.broadcast %cst_11 : f32 to vector<1x512xf32>
    %14 = arith.maximumf %12, %13 : vector<1x512xf32>
    %15 = arith.truncf %14 : vector<1x512xf32> to vector<1x512xbf16>
    %c0_12 = arith.constant 0 : index
    %c0_13 = arith.constant 0 : index
    %16 = vector.load %arg6[%c0_12, %c0_13] : memref<512x128xbf16, #tpu.memory_space<vmem>>, vector<512x128xbf16>
    %cst_14 = arith.constant dense<0.000000e+00> : vector<1x128xf32>
    %17 = tpu.matmul %15, %16, %cst_14 {dimension_numbers = #tpu.dot_dimension_numbers<[1], [0], [0], [1], [0, 0, 1, 1], [], []>} : vector<1x512xbf16>, vector<512x128xbf16>, vector<1x128xf32> -> vector<1x128xf32>
    %c0_15 = arith.constant 0 : index
    %c0_16 = arith.constant 0 : index
    %18 = vector.load %arg7[%c0_15, %c0_16] : memref<1x128xf32, #tpu.memory_space<vmem>>, vector<1x128xf32>
    %19 = arith.addf %17, %18 : vector<1x128xf32>
    %20 = math.tanh %19 : vector<1x128xf32>
    %c0_17 = arith.constant 0 : index
    %c0_18 = arith.constant 0 : index
    %21 = vector.load %arg8[%c0_17, %c0_18] : memref<1x128xf32, #tpu.memory_space<vmem>>, vector<1x128xf32>
    tpu.vector_store %arg8[%c0_17, %c0_18], %20 {strides = array<i32>} : memref<1x128xf32, #tpu.memory_space<vmem>>, vector<1x128xf32>,
    return
  }
  func.func @transform_0(%arg0: i32) -> (i32, i32) {
    %c0_i32 = arith.constant 0 : i32
    %c0_i32_0 = arith.constant 0 : i32
    return %arg0, %c0_i32 : i32, i32
  }
  func.func @transform_1(%arg0: i32) -> (i32, i32) {
    %c0_i32 = arith.constant 0 : i32
    %c0_i32_0 = arith.constant 0 : i32
    %c0_i32_1 = arith.constant 0 : i32
    return %c0_i32, %c0_i32_0 : i32, i32
  }
  func.func @transform_2(%arg0: i32) -> (i32, i32) {
    %c0_i32 = arith.constant 0 : i32
    %c0_i32_0 = arith.constant 0 : i32
    %c0_i32_1 = arith.constant 0 : i32
    return %c0_i32, %c0_i32_0 : i32, i32
  }
  func.func @transform_3(%arg0: i32) -> (i32, i32) {
    %c0_i32 = arith.constant 0 : i32
    %c0_i32_0 = arith.constant 0 : i32
    %c0_i32_1 = arith.constant 0 : i32
    return %c0_i32, %c0_i32_0 : i32, i32
  }
  func.func @transform_4(%arg0: i32) -> (i32, i32) {
    %c0_i32 = arith.constant 0 : i32
    %c0_i32_0 = arith.constant 0 : i32
    %c0_i32_1 = arith.constant 0 : i32
    return %c0_i32, %c0_i32_0 : i32, i32
  }
  func.func @transform_5(%arg0: i32) -> (i32, i32) {
    %c0_i32 = arith.constant 0 : i32
    %c0_i32_0 = arith.constant 0 : i32
    %c0_i32_1 = arith.constant 0 : i32
    return %c0_i32, %c0_i32_0 : i32, i32
  }
  func.func @transform_6(%arg0: i32) -> (i32, i32) {
    %c0_i32 = arith.constant 0 : i32
    %c0_i32_0 = arith.constant 0 : i32
    %c0_i32_1 = arith.constant 0 : i32
    return %c0_i32, %c0_i32_0 : i32, i32
  }
  func.func @transform_7(%arg0: i32) -> (i32, i32) {
    %c0_i32 = arith.constant 0 : i32
    %c0_i32_0 = arith.constant 0 : i32
    return %arg0, %c0_i32 : i32, i32
  }
}

</mosaic_0001>

<bundles_post_ra>
// kernel: tpu_custom_call.1
= control target key start
LH: loop header
LB: loop body
LE: loop exit
PB: predicated region body
PF: predicated region fallthrough
CT: control target
= control target key end

     0   :  { %12 = vsyncpa [#allocation3], 0  ;;  %s2799_s0 = inlined_call_operand.hbm [shape: f32[1,256], index: 0, kind: input, shape index: {}]   ;;  %s2800_s1 = inlined_call_operand.hbm [shape: bf16[256,512], index: 1, kind: input, shape index: {}]   ;;  %s2801_s2 = inlined_call_operand.vmem [shape: f32[1,512], index: 2, kind: input, shape index: {}]   ;;  %s2802_s3 = inlined_call_operand.hbm [shape: bf16[512,512], index: 3, kind: input, shape index: {}]   ;;  %s2803_s4 = inlined_call_operand.vmem [shape: f32[1,512], index: 4, kind: input, shape index: {}]   ;;  %s2804_s5 = inlined_call_operand.hbm [shape: bf16[512,128], index: 5, kind: input, shape index: {}]   ;;  %s2805_s6 = inlined_call_operand.vmem [shape: f32[1,128], index: 6, kind: input, shape index: {}]   ;;  %s2806_s7 = inlined_call_operand.hbm [shape: f32[1,128], index: 7, kind: output, shape index: {}]  }
   0x1   :  { %13 = vsyncpa [#allocation6], 0 }
   0x2   :  { %14 = vsyncpa [#allocation9], 0 }
   0x3   :  { %15 = vsyncpa [#allocation4], 0  ;;  %s2638_s24 = smov [#allocation5]   ;;  %s2520_s28 = scalar_lea.hbm %s2800_s1, 8192 }
   0x4   :  { %s31_s25 = sshll.u32 %s2638_s24, 4  ;;  %p2521_p0 = scmp.ne.s32.totalorder %s2800_s1, %s2520_s28  ;;  %s32_s25 = int_to_ptr.vmem [resolvable:$true] %s31_s25 }
   0x5   :  { %p2524_p1 = scmp.lt.u32.totalorder %s2520_s28, %s2800_s1 }
   0x7   :  { %p2526_p2 = pnand %p2524_p1, %p2521_p0 }
   0x9   :  { %2529 = shalt.err (!%p2526_p2)
}
   0xa   :  { %s2530_s10 = scalar_lea.vmem %s32_s25, 8192  ;;  %p2535_p4 = scmp.lt.s32.totalorder %s32_s25, %s32_s25 }
   0xb   :  { %p2531_p3 = scmp.ne.s32.totalorder %s32_s25, %s2530_s10  ;;  %p2536_p5 = scmp.lt.s32.totalorder %s2530_s10, %s2530_s10 }
   0xd   :  { %p2537_p6 = por %p2536_p5, %p2535_p4 }
   0xf   :  { %p2538_p7 = pnand %p2537_p6, %p2531_p3 }
  0x11   :  { %2541 = shalt.err (!%p2538_p7)
}
  0x12   :  { %s2639_s11 = smov 256   ;;  %s2640_s12 = smov 16  }
  0x13   :  { %37 = dma.hbm_to_vmem [thread:$0]  %s2800_s1, 8192, %s32_s25, [#allocation6], %s2639_s11, %s2639_s11, %s2640_s12  }
  0x14   :  { %s2641_s15 = smov [#allocation2]   ;;  %s2642_s17 = smov [#allocation7]  }
  0x15   :  { %s22_s16 = sshll.u32 %s2641_s15, 4  ;;  %s45_s18 = sshll.u32 %s2642_s17, 4  ;;  %s23_s16 = int_to_ptr.vmem [resolvable:$true] %s22_s16  ;;  %s46_s18 = int_to_ptr.vmem [resolvable:$true] %s45_s18 }
  0x16   :  { %s2542_s21 = scalar_lea.hbm %s2799_s0, 32 }
  0x17   :  { %p2543_p8 = scmp.ne.s32.totalorder %s2799_s0, %s2542_s21  ;;  %p2546_p9 = scmp.lt.u32.totalorder %s2542_s21, %s2799_s0 }
  0x19   :  { %p2548_p10 = pnand %p2546_p9, %p2543_p8 }
  0x1b   :  { %2551 = shalt.err (!%p2548_p10)
}
  0x1c   :  { %s2552_s1 = scalar_lea.vmem %s23_s16, 32  ;;  %p2557_p12 = scmp.lt.s32.totalorder %s23_s16, %s23_s16 }
  0x1d   :  { %p2553_p11 = scmp.ne.s32.totalorder %s23_s16, %s2552_s1  ;;  %p2558_p13 = scmp.lt.s32.totalorder %s2552_s1, %s2552_s1 }
  0x1f   :  { %p2559_p0 = por %p2558_p13, %p2557_p12 }
  0x21   :  { %p2560_p1 = pnand %p2559_p0, %p2553_p11 }
  0x23   :  { %2563 = shalt.err (!%p2560_p1)
}
  0x24   :  { %25 = dma.hbm_to_vmem [thread:$0]  %s2799_s0, 32, %s23_s16, [#allocation3]  }
  0x25   :  { %s2564_s30 = scalar_lea.hbm %s2802_s3, 16384 }
  0x26   :  { %p2565_p2 = scmp.ne.s32.totalorder %s2802_s3, %s2564_s30  ;;  %p2568_p3 = scmp.lt.u32.totalorder %s2564_s30, %s2802_s3 }
  0x28   :  { %p2570_p4 = pnand %p2568_p3, %p2565_p2 }
  0x2a   :  { %2573 = shalt.err (!%p2570_p4)
}
  0x2b   :  { %s2574_s14 = scalar_lea.vmem %s46_s18, 16384  ;;  %p2579_p6 = scmp.lt.s32.totalorder %s46_s18, %s46_s18 }
  0x2c   :  { %p2575_p5 = scmp.ne.s32.totalorder %s46_s18, %s2574_s14  ;;  %p2580_p7 = scmp.lt.s32.totalorder %s2574_s14, %s2574_s14 }
  0x2e   :  { %p2581_p8 = por %p2580_p7, %p2579_p6 }
  0x30   :  { %p2582_p9 = pnand %p2581_p8, %p2575_p5 }
  0x32   :  { %2585 = shalt.err (!%p2582_p9)
}
  0x33   :  { %51 = dma.hbm_to_vmem [thread:$0]  %s2802_s3, 16384, %s46_s18, [#allocation6], %s2639_s11, %s2639_s11, %s2640_s12  }
  0x34   :  { %s2643_s16 = smov [#allocation8]   ;;  %s2586_s21 = scalar_lea.hbm %s2804_s5, 4096 }
  0x35   :  { %s59_s17 = sshll.u32 %s2643_s16, 4  ;;  %p2587_p10 = scmp.ne.s32.totalorder %s2804_s5, %s2586_s21  ;;  %s60_s17 = int_to_ptr.vmem [resolvable:$true] %s59_s17 }
  0x36   :  { %p2590_p11 = scmp.lt.u32.totalorder %s2586_s21, %s2804_s5 }
  0x38   :  { %p2592_p12 = pnand %p2590_p11, %p2587_p10 }
  0x3a   :  { %2595 = shalt.err (!%p2592_p12)
}
  0x3b   :  { %s2596_s1 = scalar_lea.vmem %s60_s17, 4096  ;;  %p2601_p0 = scmp.lt.s32.totalorder %s60_s17, %s60_s17 }
  0x3c   :  { %p2597_p13 = scmp.ne.s32.totalorder %s60_s17, %s2596_s1  ;;  %p2602_p1 = scmp.lt.s32.totalorder %s2596_s1, %s2596_s1 }
  0x3e   :  { %p2603_p2 = por %p2602_p1, %p2601_p0 }
  0x40   :  { %p2604_p3 = pnand %p2603_p2, %p2597_p13 }
  0x42   :  { %2607 = shalt.err (!%p2604_p3)
}
  0x43   :  { %s2644_s3 = smov 64   ;;  %s2645_s11 = smov 4  }
  0x44   :  { %65 = dma.hbm_to_vmem [thread:$0]  %s2804_s5, 4096, %s60_s17, [#allocation9], %s2644_s3, %s2644_s3, %s2645_s11  }
  0x45   :  { %2630 = dma.done.wait [#allocation3], 32  }
  0x46   :  { %2631 = vsyncadd [#allocation3], 4294967264 }
  0x47   :  { %2632 = dma.done.wait [#allocation6], 24576  }
  0x48   :  { %2633 = vsyncadd [#allocation6], 4294942720 }
  0x49   :  { %2634 = dma.done.wait [#allocation9], 4096  }
  0x4a   :  { %2635 = vsyncadd [#allocation9], 4294963200  ;;  %v2198_v0 = vld [vmem:[#allocation5 + $0x4] ss:$16 sps:$4 sm:$0xff]   ;;  %v2200_v1 = vld [vmem:[#allocation5] ss:$16 sps:$4 sm:$0xff]   ;;  %v83_v8 = vlaneseq }
  0x4b   :  { %501 = vmatprep.subr.bf16.mxu0 %v2198_v0  ;;  %v2201_v2 = vld [vmem:[#allocation5 + $0x24] ss:$16 sps:$4 sm:$0xff]   ;;  %v2203_v3 = vld [vmem:[#allocation5 + $0x20] ss:$16 sps:$4 sm:$0xff]   ;;  %v2245_v17 = vld [vmem:[#allocation5 + $0xc] ss:$16 sps:$4 sm:$0xff]  }
  0x4c   :  { %502 = vmatpush1.bf16.msra.mxu0 %v2200_v1  ;;  %v2204_v4 = vld [vmem:[#allocation5 + $0x44] ss:$16 sps:$4 sm:$0xff]   ;;  %v2206_v5 = vld [vmem:[#allocation5 + $0x40] ss:$16 sps:$4 sm:$0xff]   ;;  %v2741_v11 = vshrl.u32 %v83_v8, 7  ;;  %542 = vmatprep.subr.bf16.mxu1 %v2245_v17  ;;  %s2646_s29 = smov [#allocation10]  }
  0x4d   :  { %503 = vmatprep.subr.bf16.mxu0 %v2201_v2  ;;  %v2207_v6 = vld [vmem:[#allocation5 + $0x64] ss:$16 sps:$4 sm:$0xff]   ;;  %v2209_v7 = vld [vmem:[#allocation5 + $0x60] ss:$16 sps:$4 sm:$0xff]   ;;  %v2248_v19 = vld [vmem:[#allocation5 + $0x8] ss:$16 sps:$4 sm:$0xff]  }
  0x4e   :  { %v2210_v9 = vld [vmem:[#allocation5 + $0x84] ss:$16 sps:$4 sm:$0xff]   ;;  %v2212_v10 = vld [vmem:[#allocation5 + $0x80] ss:$16 sps:$4 sm:$0xff]   ;;  %v2744_v14 = vsub.s32 1, %v2741_v11  ;;  %543 = vmatpush1.bf16.msra.mxu1 %v2248_v19  ;;  %v2751_v55 = vsub.s32 0, %v2741_v11 }
  0x4f   :  { %v2213_v12 = vld [vmem:[#allocation5 + $0xa4] ss:$16 sps:$4 sm:$0xff]   ;;  %v2215_v13 = vld [vmem:[#allocation5 + $0xa0] ss:$16 sps:$4 sm:$0xff]   ;;  %v2746_v20 = vld [vmem:[#allocation2] sm:$0x3] }
  0x50   :  { %504 = vmatpush1.bf16.msra.mxu0 %v2203_v3  ;;  %v2216_v15 = vld [vmem:[#allocation5 + $0xc4] ss:$16 sps:$4 sm:$0xff]   ;;  %v2218_v16 = vld [vmem:[#allocation5 + $0xc0] ss:$16 sps:$4 sm:$0xff]   ;;  %v90_v21 = vrot.slane %v2746_v20, %v2744_v14  ;;  %v2249_v22 = vld [vmem:[#allocation5 + $0x2c] ss:$16 sps:$4 sm:$0xff]   ;;  %v86_v60 = vrot.slane %v2746_v20, %v2751_v55 }
  0x51   :  { %505 = vmatprep.subr.bf16.mxu0 %v2204_v4  ;;  %v2219_v18 = vld [vmem:[#allocation5 + $0xe4] ss:$16 sps:$4 sm:$0xff]   ;;  %v2251_v23 = vld [vmem:[#allocation5 + $0x28] ss:$16 sps:$4 sm:$0xff]   ;;  %544 = vmatprep.subr.bf16.mxu1 %v2249_v22  ;;  %v2252_v25 = vld [vmem:[#allocation5 + $0x4c] ss:$16 sps:$4 sm:$0xff]  }
  0x52   :  { %v94_v24 = vpack.c.bf16 %v90_v21, %v90_v21  ;;  %v2221_v26 = vld [vmem:[#allocation5 + $0xe0] ss:$16 sps:$4 sm:$0xff]   ;;  %v2222_v27 = vld [vmem:[#allocation5 + $0x104] ss:$16 sps:$4 sm:$0xff]   ;;  %545 = vmatpush1.bf16.msra.mxu1 %v2251_v23  ;;  %v2254_v28 = vld [vmem:[#allocation5 + $0x48] ss:$16 sps:$4 sm:$0xff]   ;;  %v93_v0 = vpack.c.bf16 %v86_v60, %v86_v60 }
  0x53   :  { %546 = vmatprep.subr.bf16.mxu1 %v2252_v25  ;;  %v2255_v29 = vld [vmem:[#allocation5 + $0x6c] ss:$16 sps:$4 sm:$0xff]   ;;  %v2224_v30 = vld [vmem:[#allocation5 + $0x100] ss:$16 sps:$4 sm:$0xff]   ;;  %v2225_v31 = vld [vmem:[#allocation5 + $0x124] ss:$16 sps:$4 sm:$0xff]  }
  0x54   :  { %506 = vmatpush1.bf16.msra.mxu0 %v2206_v5  ;;  %533 = vmatprep.mubr.bf16.mxu0 %v94_v24  ;;  %v2257_v32 = vld [vmem:[#allocation5 + $0x68] ss:$16 sps:$4 sm:$0xff]   ;;  %v2258_v33 = vld [vmem:[#allocation5 + $0x8c] ss:$16 sps:$4 sm:$0xff]   ;;  %v2227_v34 = vld [vmem:[#allocation5 + $0x120] ss:$16 sps:$4 sm:$0xff]  }
  0x55   :  { %507 = vmatprep.subr.bf16.mxu0 %v2207_v6  ;;  %574 = vmatprep.mubr.bf16.mxu1 %v94_v24  ;;  %v2228_v35 = vld [vmem:[#allocation5 + $0x144] ss:$16 sps:$4 sm:$0xff]   ;;  %v2260_v36 = vld [vmem:[#allocation5 + $0x88] ss:$16 sps:$4 sm:$0xff]   ;;  %v2261_v37 = vld [vmem:[#allocation5 + $0xac] ss:$16 sps:$4 sm:$0xff]  }
  0x56   :  { %547 = vmatpush1.bf16.msra.mxu1 %v2254_v28  ;;  %v2230_v38 = vld [vmem:[#allocation5 + $0x140] ss:$16 sps:$4 sm:$0xff]   ;;  %v2231_v39 = vld [vmem:[#allocation5 + $0x164] ss:$16 sps:$4 sm:$0xff]   ;;  %v2263_v40 = vld [vmem:[#allocation5 + $0xa8] ss:$16 sps:$4 sm:$0xff]  }
  0x57   :  { %548 = vmatprep.subr.bf16.mxu1 %v2255_v29  ;;  %v2264_v41 = vld [vmem:[#allocation5 + $0xcc] ss:$16 sps:$4 sm:$0xff]   ;;  %v2233_v42 = vld [vmem:[#allocation5 + $0x160] ss:$16 sps:$4 sm:$0xff]   ;;  %v2234_v43 = vld [vmem:[#allocation5 + $0x184] ss:$16 sps:$4 sm:$0xff]  }
  0x58   :  { %508 = vmatpush1.bf16.msra.mxu0 %v2209_v7  ;;  %v2266_v44 = vld [vmem:[#allocation5 + $0xc8] ss:$16 sps:$4 sm:$0xff]   ;;  %v2267_v45 = vld [vmem:[#allocation5 + $0xec] ss:$16 sps:$4 sm:$0xff]   ;;  %v2236_v46 = vld [vmem:[#allocation5 + $0x180] ss:$16 sps:$4 sm:$0xff]  }
  0x59   :  { %509 = vmatprep.subr.bf16.mxu0 %v2210_v9  ;;  %v2237_v47 = vld [vmem:[#allocation5 + $0x1a4] ss:$16 sps:$4 sm:$0xff]   ;;  %v2269_v48 = vld [vmem:[#allocation5 + $0xe8] ss:$16 sps:$4 sm:$0xff]   ;;  %v2270_v49 = vld [vmem:[#allocation5 + $0x10c] ss:$16 sps:$4 sm:$0xff]  }
  0x5a   :  { %549 = vmatpush1.bf16.msra.mxu1 %v2257_v32  ;;  %v2239_v50 = vld [vmem:[#allocation5 + $0x1a0] ss:$16 sps:$4 sm:$0xff]   ;;  %v2240_v51 = vld [vmem:[#allocation5 + $0x1c4] ss:$16 sps:$4 sm:$0xff]   ;;  %v2272_v52 = vld [vmem:[#allocation5 + $0x108] ss:$16 sps:$4 sm:$0xff]  }
  0x5b   :  { %550 = vmatprep.subr.bf16.mxu1 %v2258_v33  ;;  %v2273_v53 = vld [vmem:[#allocation5 + $0x12c] ss:$16 sps:$4 sm:$0xff]   ;;  %v2242_v54 = vld [vmem:[#allocation5 + $0x1c0] ss:$16 sps:$4 sm:$0xff]   ;;  %v2243_v56 = vld [vmem:[#allocation5 + $0x1e4] ss:$16 sps:$4 sm:$0xff]  }
  0x5c   :  { %510 = vmatpush1.bf16.msra.mxu0 %v2212_v10  ;;  %v2275_v57 = vld [vmem:[#allocation5 + $0x128] ss:$16 sps:$4 sm:$0xff]   ;;  %v2276_v58 = vld [vmem:[#allocation5 + $0x14c] ss:$16 sps:$4 sm:$0xff]   ;;  %v2247_v59 = vld [vmem:[#allocation5 + $0x1e0] ss:$16 sps:$4 sm:$0xff]  }
  0x5d   :  { %511 = vmatprep.subr.bf16.mxu0 %v2213_v12  ;;  %v2278_v61 = vld [vmem:[#allocation5 + $0x148] ss:$16 sps:$4 sm:$0xff]   ;;  %v2296_v62 = vld [vmem:[#allocation7 + $0x4] ss:$16 sps:$4 sm:$0xff]   ;;  %v2279_v63 = vld [vmem:[#allocation5 + $0x16c] ss:$16 sps:$4 sm:$0xff]  }
  0x5e   :  { %551 = vmatpush1.bf16.msra.mxu1 %v2260_v36  ;;  %v2281_v1 = vld [vmem:[#allocation5 + $0x168] ss:$16 sps:$4 sm:$0xff]   ;;  %v2294_v2 = vld [vmem:[#allocation7] ss:$16 sps:$4 sm:$0xff]   ;;  %v2302_v3 = vld [vmem:[#allocation7 + $0x24] ss:$16 sps:$4 sm:$0xff]  }
  0x5f   :  { %552 = vmatprep.subr.bf16.mxu1 %v2261_v37  ;;  %v2282_v4 = vld [vmem:[#allocation5 + $0x18c] ss:$16 sps:$4 sm:$0xff]   ;;  %v2284_v5 = vld [vmem:[#allocation5 + $0x188] ss:$16 sps:$4 sm:$0xff]   ;;  %v2300_v6 = vld [vmem:[#allocation7 + $0x20] ss:$16 sps:$4 sm:$0xff]  }
  0x60   :  { %512 = vmatpush1.bf16.msra.mxu0 %v2215_v13  ;;  %v2308_v7 = vld [vmem:[#allocation7 + $0x44] ss:$16 sps:$4 sm:$0xff]   ;;  %v2285_v8 = vld [vmem:[#allocation5 + $0x1ac] ss:$16 sps:$4 sm:$0xff]   ;;  %v2287_v9 = vld [vmem:[#allocation5 + $0x1a8] ss:$16 sps:$4 sm:$0xff]  }
  0x61   :  { %513 = vmatprep.subr.bf16.mxu0 %v2216_v15  ;;  %v2306_v10 = vld [vmem:[#allocation7 + $0x40] ss:$16 sps:$4 sm:$0xff]   ;;  %v2314_v12 = vld [vmem:[#allocation7 + $0x64] ss:$16 sps:$4 sm:$0xff]   ;;  %v2288_v13 = vld [vmem:[#allocation5 + $0x1cc] ss:$16 sps:$4 sm:$0xff]  }
  0x62   :  { %553 = vmatpush1.bf16.msra.mxu1 %v2263_v40  ;;  %v2290_v15 = vld [vmem:[#allocation5 + $0x1c8] ss:$16 sps:$4 sm:$0xff]   ;;  %v2320_v17 = vld [vmem:[#allocation7 + $0x84] ss:$16 sps:$4 sm:$0xff]   ;;  %v2318_v20 = vld [vmem:[#allocation7 + $0x80] ss:$16 sps:$4 sm:$0xff]  }
  0x63   :  { %554 = vmatprep.subr.bf16.mxu1 %v2264_v41  ;;  %v2293_v19 = vld [vmem:[#allocation5 + $0x1e8] ss:$16 sps:$4 sm:$0xff]   ;;  %v2299_v21 = vld [vmem:[#allocation7 + $0xc] ss:$16 sps:$4 sm:$0xff]   ;;  %v2326_v22 = vld [vmem:[#allocation7 + $0xa4] ss:$16 sps:$4 sm:$0xff]  }
  0x64   :  { %514 = vmatpush1.bf16.msra.mxu0 %v2218_v16  ;;  %v2312_v16 = vld [vmem:[#allocation7 + $0x60] ss:$16 sps:$4 sm:$0xff]   ;;  %v2297_v24 = vld [vmem:[#allocation7 + $0x8] ss:$16 sps:$4 sm:$0xff]   ;;  %v2332_v25 = vld [vmem:[#allocation7 + $0xc4] ss:$16 sps:$4 sm:$0xff]  }
  0x65   :  { %515 = vmatprep.subr.bf16.mxu0 %v2219_v18  ;;  %v2291_v18 = vld [vmem:[#allocation5 + $0x1ec] ss:$16 sps:$4 sm:$0xff]   ;;  %v2324_v23 = vld [vmem:[#allocation7 + $0xa0] ss:$16 sps:$4 sm:$0xff]   ;;  %v2303_v28 = vld [vmem:[#allocation7 + $0x28] ss:$16 sps:$4 sm:$0xff]  }
  0x66   :  { %555 = vmatpush1.bf16.msra.mxu1 %v2266_v44  ;;  %v2338_v29 = vld [vmem:[#allocation7 + $0xe4] ss:$16 sps:$4 sm:$0xff]   ;;  %v2309_v32 = vld [vmem:[#allocation7 + $0x48] ss:$16 sps:$4 sm:$0xff]   ;;  %v2359_v60 = vld [vmem:[#allocation7 + $0x14c] ss:$16 sps:$4 sm:$0xff]  }
  0x67   :  { %556 = vmatprep.subr.bf16.mxu1 %v2267_v45  ;;  %v2344_v33 = vld [vmem:[#allocation7 + $0x104] ss:$16 sps:$4 sm:$0xff]   ;;  %v2315_v36 = vld [vmem:[#allocation7 + $0x68] ss:$16 sps:$4 sm:$0xff]   ;;  %s1898_s30 = sshll.u32 %s2646_s29, 4  ;;  %s1899_s30 = int_to_ptr.vmem [resolvable:$true] %s1898_s30 }
  0x68   :  { %516 = vmatpush1.bf16.msra.mxu0 %v2221_v26  ;;  %v2305_v26 = vld [vmem:[#allocation7 + $0x2c] ss:$16 sps:$4 sm:$0xff]   ;;  %v2350_v37 = vld [vmem:[#allocation7 + $0x124] ss:$16 sps:$4 sm:$0xff]   ;;  %v2321_v40 = vld [vmem:[#allocation7 + $0x88] ss:$16 sps:$4 sm:$0xff]   ;;  %p2613_p5 = scmp.lt.s32.totalorder %s1899_s30, %s1899_s30 }
  0x69   :  { %517 = vmatprep.subr.bf16.mxu0 %v2222_v27  ;;  %v2330_v27 = vld [vmem:[#allocation7 + $0xc0] ss:$16 sps:$4 sm:$0xff]   ;;  %v2356_v41 = vld [vmem:[#allocation7 + $0x144] ss:$16 sps:$4 sm:$0xff]   ;;  %v2327_v44 = vld [vmem:[#allocation7 + $0xa8] ss:$16 sps:$4 sm:$0xff]  }
  0x6a   :  { %557 = vmatpush1.bf16.msra.mxu1 %v2269_v48  ;;  %v2362_v45 = vld [vmem:[#allocation7 + $0x164] ss:$16 sps:$4 sm:$0xff]   ;;  %v2333_v48 = vld [vmem:[#allocation7 + $0xc8] ss:$16 sps:$4 sm:$0xff]   ;;  %s2608_s8 = scalar_lea.vmem %s1899_s30, 16  ;;  %s2612_s9 = scalar_lea.vmem %s1899_s30, 32 }
  0x6b   :  { %558 = vmatprep.subr.bf16.mxu1 %v2270_v49  ;;  %v2368_v49 = vld [vmem:[#allocation7 + $0x184] ss:$16 sps:$4 sm:$0xff]   ;;  %p2609_p4 = scmp.ne.s32.totalorder %s1899_s30, %s2608_s8  ;;  %p2614_p6 = scmp.lt.s32.totalorder %s2612_s9, %s2608_s8 }
  0x6c   :  { %518 = vmatpush1.bf16.msra.mxu0 %v2224_v30  ;;  %v2311_v30 = vld [vmem:[#allocation7 + $0x4c] ss:$16 sps:$4 sm:$0xff]  }
  0x6d   :  { %519 = vmatprep.subr.bf16.mxu0 %v2225_v31  ;;  %v2336_v31 = vld [vmem:[#allocation7 + $0xe0] ss:$16 sps:$4 sm:$0xff]   ;;  %p2615_p7 = por %p2614_p6, %p2613_p5 }
  0x6e   :  { %559 = vmatpush1.bf16.msra.mxu1 %v2272_v52  ;;  %v2339_v52 = vld [vmem:[#allocation7 + $0xe8] ss:$16 sps:$4 sm:$0xff]  }
  0x6f   :  { %560 = vmatprep.subr.bf16.mxu1 %v2273_v53  ;;  %v2374_v53 = vld [vmem:[#allocation7 + $0x1a4] ss:$16 sps:$4 sm:$0xff]   ;;  %p2616_p8 = pnand %p2615_p7, %p2609_p4 }
  0x70   :  { %520 = vmatpush1.bf16.msra.mxu0 %v2227_v34  ;;  %v2317_v34 = vld [vmem:[#allocation7 + $0x6c] ss:$16 sps:$4 sm:$0xff]  }
  0x71   :  { %521 = vmatprep.subr.bf16.mxu0 %v2228_v35  ;;  %v2342_v35 = vld [vmem:[#allocation7 + $0x100] ss:$16 sps:$4 sm:$0xff]  }
  0x72   :  { %561 = vmatpush1.bf16.msra.mxu1 %v2275_v57  ;;  %v2345_v57 = vld [vmem:[#allocation7 + $0x108] ss:$16 sps:$4 sm:$0xff]  }
  0x73   :  { %562 = vmatprep.subr.bf16.mxu1 %v2276_v58  ;;  %v2353_v58 = vld [vmem:[#allocation7 + $0x12c] ss:$16 sps:$4 sm:$0xff]  }
  0x74   :  { %522 = vmatpush1.bf16.msra.mxu0 %v2230_v38  ;;  %v2323_v38 = vld [vmem:[#allocation7 + $0x8c] ss:$16 sps:$4 sm:$0xff]  }
  0x75   :  { %523 = vmatprep.subr.bf16.mxu0 %v2231_v39  ;;  %v2348_v39 = vld [vmem:[#allocation7 + $0x120] ss:$16 sps:$4 sm:$0xff]  }
  0x76   :  { %563 = vmatpush1.bf16.msra.mxu1 %v2278_v61  ;;  %v2357_v61 = vld [vmem:[#allocation7 + $0x148] ss:$16 sps:$4 sm:$0xff]  }
  0x77   :  { %564 = vmatprep.subr.bf16.mxu1 %v2279_v63  ;;  %v2363_v63 = vld [vmem:[#allocation7 + $0x168] ss:$16 sps:$4 sm:$0xff]  }
  0x78   :  { %524 = vmatpush1.bf16.msra.mxu0 %v2233_v42  ;;  %v2329_v42 = vld [vmem:[#allocation7 + $0xac] ss:$16 sps:$4 sm:$0xff]  }
  0x79   :  { %525 = vmatprep.subr.bf16.mxu0 %v2234_v43  ;;  %v2354_v43 = vld [vmem:[#allocation7 + $0x140] ss:$16 sps:$4 sm:$0xff]  }
  0x7a   :  { %565 = vmatpush1.bf16.msra.mxu1 %v2281_v1  ;;  %v2369_v1 = vld [vmem:[#allocation7 + $0x188] ss:$16 sps:$4 sm:$0xff]  }
  0x7b   :  { %566 = vmatprep.subr.bf16.mxu1 %v2282_v4  ;;  %v2380_v4 = vld [vmem:[#allocation7 + $0x1c4] ss:$16 sps:$4 sm:$0xff]  }
  0x7c   :  { %526 = vmatpush1.bf16.msra.mxu0 %v2236_v46  ;;  %v2335_v46 = vld [vmem:[#allocation7 + $0xcc] ss:$16 sps:$4 sm:$0xff]  }
  0x7d   :  { %527 = vmatprep.subr.bf16.mxu0 %v2237_v47  ;;  %v2360_v47 = vld [vmem:[#allocation7 + $0x160] ss:$16 sps:$4 sm:$0xff]  }
  0x7e   :  { %567 = vmatpush1.bf16.msra.mxu1 %v2284_v5  ;;  %v2383_v5 = vld [vmem:[#allocation7 + $0x1cc] ss:$16 sps:$4 sm:$0xff]  }
  0x7f   :  { %568 = vmatprep.subr.bf16.mxu1 %v2285_v8  ;;  %v2386_v8 = vld [vmem:[#allocation7 + $0x1e4] ss:$16 sps:$4 sm:$0xff]  }
  0x80   :  { %528 = vmatpush1.bf16.msra.mxu0 %v2239_v50  ;;  %v2341_v50 = vld [vmem:[#allocation7 + $0xec] ss:$16 sps:$4 sm:$0xff]  }
  0x81   :  { %529 = vmatprep.subr.bf16.mxu0 %v2240_v51  ;;  %v2366_v51 = vld [vmem:[#allocation7 + $0x180] ss:$16 sps:$4 sm:$0xff]  }
  0x82   :  { %569 = vmatpush1.bf16.msra.mxu1 %v2287_v9  ;;  %v2389_v9 = vld [vmem:[#allocation7 + $0x1ec] ss:$16 sps:$4 sm:$0xff]  }
  0x83   :  { %570 = vmatprep.subr.bf16.mxu1 %v2288_v13  ;;  %v2392_v13 = vld [vmem:[#allocation7 + $0x204] ss:$16 sps:$4 sm:$0xff]  }
  0x84   :  { %530 = vmatpush1.bf16.msra.mxu0 %v2242_v54  ;;  %v2347_v54 = vld [vmem:[#allocation7 + $0x10c] ss:$16 sps:$4 sm:$0xff]  }
  0x85   :  { %531 = vmatprep.subr.bf16.mxu0 %v2243_v56  ;;  %v2372_v56 = vld [vmem:[#allocation7 + $0x1a0] ss:$16 sps:$4 sm:$0xff]  }
  0x86   :  { %571 = vmatpush1.bf16.msra.mxu1 %v2290_v15  ;;  %v2395_v15 = vld [vmem:[#allocation7 + $0x20c] ss:$16 sps:$4 sm:$0xff]  }
  0x87   :  { %572 = vmatprep.subr.bf16.mxu1 %v2291_v18 }
  0x88   :  { %532 = vmatpush1.bf16.msra.mxu0 %v2247_v59  ;;  %v2351_v59 = vld [vmem:[#allocation7 + $0x128] ss:$16 sps:$4 sm:$0xff]  }
  0x89   :  { %1381 = vmatprep.subr.bf16.mxu0 %v2296_v62  ;;  %v2365_v62 = vld [vmem:[#allocation7 + $0x16c] ss:$16 sps:$4 sm:$0xff]  }
  0x8a   :  { %573 = vmatpush1.bf16.msra.mxu1 %v2293_v19 }
  0x8b   :  { %534 = vmatmul.mubr.bf16.vlgmr.msra.gmra.mrb[0].mxu0 %v93_v0  ;;  %1463 = vmatprep.subr.bf16.mxu1 %v2299_v21 }
  0x8c   :  { %1382 = vmatpush1.bf16.msra.mxu0 %v2294_v2  ;;  %v2377_v2 = vld [vmem:[#allocation7 + $0x1ac] ss:$16 sps:$4 sm:$0xff]  }
  0x8d   :  { %1383 = vmatprep.subr.bf16.mxu0 %v2302_v3  ;;  %575 = vmatmul.mubr.bf16.vlgmr.msra.gmra.mrb[0].mxu1 %v93_v0  ;;  %v2371_v0 = vld [vmem:[#allocation7 + $0x18c] ss:$16 sps:$4 sm:$0xff]   ;;  %v2375_v3 = vld [vmem:[#allocation7 + $0x1a8] ss:$16 sps:$4 sm:$0xff]  }
  0x8e   :  { %1464 = vmatpush1.bf16.msra.mxu1 %v2297_v24 }
  0x8f   :  { %1465 = vmatprep.subr.bf16.mxu1 %v2305_v26 }
  0x90   :  { %1384 = vmatpush1.bf16.msra.mxu0 %v2300_v6  ;;  %v2378_v6 = vld [vmem:[#allocation7 + $0x1c0] ss:$16 sps:$4 sm:$0xff]  }
  0x91   :  { %1385 = vmatprep.subr.bf16.mxu0 %v2308_v7  ;;  %v2381_v7 = vld [vmem:[#allocation7 + $0x1c8] ss:$16 sps:$4 sm:$0xff]  }
  0x92   :  { %1466 = vmatpush1.bf16.msra.mxu1 %v2303_v28  ;;  %v2390_v28 = vld [vmem:[#allocation7 + $0x200] ss:$16 sps:$4 sm:$0xff]  }
  0x93   :  { %1467 = vmatprep.subr.bf16.mxu1 %v2311_v30 }
  0x94   :  { %1386 = vmatpush1.bf16.msra.mxu0 %v2306_v10  ;;  %v2384_v10 = vld [vmem:[#allocation7 + $0x1e0] ss:$16 sps:$4 sm:$0xff]  }
  0x95   :  { %1387 = vmatprep.subr.bf16.mxu0 %v2314_v12  ;;  %v2387_v12 = vld [vmem:[#allocation7 + $0x1e8] ss:$16 sps:$4 sm:$0xff]  }
  0x96   :  { %1468 = vmatpush1.bf16.msra.mxu1 %v2309_v32  ;;  %v2401_v32 = vld [vmem:[#allocation7 + $0x22c] ss:$16 sps:$4 sm:$0xff]  }
  0x97   :  { %1469 = vmatprep.subr.bf16.mxu1 %v2317_v34  ;;  %v2399_v34 = vld [vmem:[#allocation7 + $0x228] ss:$16 sps:$4 sm:$0xff]  }
  0x98   :  { %1388 = vmatpush1.bf16.msra.mxu0 %v2312_v16  ;;  %v2758_v16 = vld [vmem:[%s2801_s2] sm:$0xf] }
  0x99   :  { %1389 = vmatprep.subr.bf16.mxu0 %v2320_v17  ;;  %v484_v17 = vrot.slane %v2758_v16, %v2751_v55  ;;  %v488_v18 = vrot.slane %v2758_v16, %v2744_v14 }
  0x9a   :  { %1470 = vmatpush1.bf16.msra.mxu1 %v2315_v36  ;;  %v2407_v36 = vld [vmem:[#allocation7 + $0x24c] ss:$16 sps:$4 sm:$0xff]  }
  0x9b   :  { %1471 = vmatprep.subr.bf16.mxu1 %v2323_v38  ;;  %v2405_v38 = vld [vmem:[#allocation7 + $0x248] ss:$16 sps:$4 sm:$0xff]  }
  0x9c   :  { %1390 = vmatpush1.bf16.msra.mxu0 %v2318_v20 }
  0x9d   :  { %1391 = vmatprep.subr.bf16.mxu0 %v2326_v22 }
  0x9e   :  { %1472 = vmatpush1.bf16.msra.mxu1 %v2321_v40  ;;  %v2413_v40 = vld [vmem:[#allocation7 + $0x26c] ss:$16 sps:$4 sm:$0xff]  }
  0x9f   :  { %1473 = vmatprep.subr.bf16.mxu1 %v2329_v42  ;;  %v2408_v42 = vld [vmem:[#allocation7 + $0x260] ss:$16 sps:$4 sm:$0xff]  }
  0xa0   :  { %1392 = vmatpush1.bf16.msra.mxu0 %v2324_v23 }
  0xa1   :  { %1393 = vmatprep.subr.bf16.mxu0 %v2332_v25 }
  0xa2   :  { %1474 = vmatpush1.bf16.msra.mxu1 %v2327_v44  ;;  %v2416_v44 = vld [vmem:[#allocation7 + $0x284] ss:$16 sps:$4 sm:$0xff]  }
  0xa3   :  { %1475 = vmatprep.subr.bf16.mxu1 %v2335_v46 }
  0xa4   :  { %1394 = vmatpush1.bf16.msra.mxu0 %v2330_v27 }
  0xa5   :  { %1395 = vmatprep.subr.bf16.mxu0 %v2338_v29  ;;  %v2393_v29 = vld [vmem:[#allocation7 + $0x208] ss:$16 sps:$4 sm:$0xff]  }
  0xa6   :  { %1476 = vmatpush1.bf16.msra.mxu1 %v2333_v48  ;;  %v2414_v48 = vld [vmem:[#allocation7 + $0x280] ss:$16 sps:$4 sm:$0xff]  }
  0xa7   :  { %1477 = vmatprep.subr.bf16.mxu1 %v2341_v50 }
  0xa8   :  { %1396 = vmatpush1.bf16.msra.mxu0 %v2336_v31  ;;  %v2398_v31 = vld [vmem:[#allocation7 + $0x224] ss:$16 sps:$4 sm:$0xff]  }
  0xa9   :  { %1397 = vmatprep.subr.bf16.mxu0 %v2344_v33  ;;  %v2396_v33 = vld [vmem:[#allocation7 + $0x220] ss:$16 sps:$4 sm:$0xff]  }
  0xaa   :  { %1478 = vmatpush1.bf16.msra.mxu1 %v2339_v52  ;;  %v2425_v52 = vld [vmem:[#allocation7 + $0x2ac] ss:$16 sps:$4 sm:$0xff]  }
  0xab   :  { %1479 = vmatprep.subr.bf16.mxu1 %v2347_v54 }
  0xac   :  { %1398 = vmatpush1.bf16.msra.mxu0 %v2342_v35  ;;  %v2404_v35 = vld [vmem:[#allocation7 + $0x244] ss:$16 sps:$4 sm:$0xff]  }
  0xad   :  { %1399 = vmatprep.subr.bf16.mxu0 %v2350_v37  ;;  %v2402_v37 = vld [vmem:[#allocation7 + $0x240] ss:$16 sps:$4 sm:$0xff]  }
  0xae   :  { %1480 = vmatpush1.bf16.msra.mxu1 %v2345_v57 }
  0xaf   :  { %1481 = vmatprep.subr.bf16.mxu1 %v2353_v58  ;;  %v2420_v58 = vld [vmem:[#allocation7 + $0x2a0] ss:$16 sps:$4 sm:$0xff]  }
  0xb0   :  { %1400 = vmatpush1.bf16.msra.mxu0 %v2348_v39  ;;  %v2410_v39 = vld [vmem:[#allocation7 + $0x264] ss:$16 sps:$4 sm:$0xff]  }
  0xb1   :  { %1401 = vmatprep.subr.bf16.mxu0 %v2356_v41  ;;  %v495_v41 = vsub.s32 3, %v2741_v11 }
  0xb2   :  { %1482 = vmatpush1.bf16.msra.mxu1 %v2351_v59  ;;  %v2423_v59 = vld [vmem:[#allocation7 + $0x2a8] ss:$16 sps:$4 sm:$0xff]  }
  0xb3   :  { %1483 = vmatprep.subr.bf16.mxu1 %v2359_v60  ;;  %v496_v46 = vrot.slane %v2758_v16, %v495_v41  ;;  %v2428_v60 = vld [vmem:[#allocation7 + $0x2c4] ss:$16 sps:$4 sm:$0xff]  }
  0xb4   :  { %1402 = vmatpush1.bf16.msra.mxu0 %v2354_v43  ;;  %v2411_v43 = vld [vmem:[#allocation7 + $0x268] ss:$16 sps:$4 sm:$0xff]  }
  0xb5   :  { %1403 = vmatprep.subr.bf16.mxu0 %v2362_v45  ;;  %v2419_v45 = vld [vmem:[#allocation7 + $0x28c] ss:$16 sps:$4 sm:$0xff]  }
  0xb6   :  { %1484 = vmatpush1.bf16.msra.mxu1 %v2357_v61  ;;  %v2431_v61 = vld [vmem:[#allocation7 + $0x2cc] ss:$16 sps:$4 sm:$0xff]  }
  0xb7   :  { %1485 = vmatprep.subr.bf16.mxu1 %v2365_v62 }
  0xb8   :  { %1404 = vmatpush1.bf16.msra.mxu0 %v2360_v47 }
  0xb9   :  { %1405 = vmatprep.subr.bf16.mxu0 %v2368_v49  ;;  %v2417_v49 = vld [vmem:[#allocation7 + $0x288] ss:$16 sps:$4 sm:$0xff]  }
  0xba   :  { %1486 = vmatpush1.bf16.msra.mxu1 %v2363_v63  ;;  %v2426_v63 = vld [vmem:[#allocation7 + $0x2c0] ss:$16 sps:$4 sm:$0xff]  }
  0xbb   :  { %1487 = vmatprep.subr.bf16.mxu1 %v2371_v0  ;;  %v2429_v0 = vld [vmem:[#allocation7 + $0x2c8] ss:$16 sps:$4 sm:$0xff]  }
  0xbc   :  { %1406 = vmatpush1.bf16.msra.mxu0 %v2366_v51  ;;  %v2422_v51 = vld [vmem:[#allocation7 + $0x2a4] ss:$16 sps:$4 sm:$0xff]  }
  0xbd   :  { %1407 = vmatprep.subr.bf16.mxu0 %v2374_v53 }
  0xbe   :  { %1488 = vmatpush1.bf16.msra.mxu1 %v2369_v1  ;;  %v2434_v1 = vld [vmem:[#allocation7 + $0x2e4] ss:$16 sps:$4 sm:$0xff]  }
  0xbf   :  { %1489 = vmatprep.subr.bf16.mxu1 %v2377_v2  ;;  %v2437_v2 = vld [vmem:[#allocation7 + $0x2ec] ss:$16 sps:$4 sm:$0xff]  }
  0xc0   :  { %1408 = vmatpush1.bf16.msra.mxu0 %v2372_v56 }
  0xc1   :  { %1409 = vmatprep.subr.bf16.mxu0 %v2380_v4  ;;  %v2435_v4 = vld [vmem:[#allocation7 + $0x2e8] ss:$16 sps:$4 sm:$0xff]  }
  0xc2   :  { %1490 = vmatpush1.bf16.msra.mxu1 %v2375_v3  ;;  %v2432_v3 = vld [vmem:[#allocation7 + $0x2e0] ss:$16 sps:$4 sm:$0xff]  }
  0xc3   :  { %1491 = vmatprep.subr.bf16.mxu1 %v2383_v5  ;;  %v2440_v5 = vld [vmem:[#allocation7 + $0x304] ss:$16 sps:$4 sm:$0xff]  }
  0xc4   :  { %1410 = vmatpush1.bf16.msra.mxu0 %v2378_v6  ;;  %v2443_v6 = vld [vmem:[#allocation7 + $0x30c] ss:$16 sps:$4 sm:$0xff]  }
  0xc5   :  { %1411 = vmatprep.subr.bf16.mxu0 %v2386_v8  ;;  %v2441_v8 = vld [vmem:[#allocation7 + $0x308] ss:$16 sps:$4 sm:$0xff]  }
  0xc6   :  { %1492 = vmatpush1.bf16.msra.mxu1 %v2381_v7  ;;  %v2438_v7 = vld [vmem:[#allocation7 + $0x300] ss:$16 sps:$4 sm:$0xff]  }
  0xc7   :  { %1493 = vmatprep.subr.bf16.mxu1 %v2389_v9  ;;  %v2446_v9 = vld [vmem:[#allocation7 + $0x324] ss:$16 sps:$4 sm:$0xff]  }
  0xc8   :  { %1412 = vmatpush1.bf16.msra.mxu0 %v2384_v10  ;;  %v2449_v10 = vld [vmem:[#allocation7 + $0x32c] ss:$16 sps:$4 sm:$0xff]  }
  0xc9   :  { %1422 = vmatprep.subr.bf16.mxu0 %v2392_v13  ;;  %v2447_v13 = vld [vmem:[#allocation7 + $0x328] ss:$16 sps:$4 sm:$0xff]  }
  0xca   :  { %1494 = vmatpush1.bf16.msra.mxu1 %v2387_v12  ;;  %v2444_v12 = vld [vmem:[#allocation7 + $0x320] ss:$16 sps:$4 sm:$0xff]  }
  0xcb   :  { %1504 = vmatprep.subr.bf16.mxu1 %v2395_v15  ;;  %v2452_v15 = vld [vmem:[#allocation7 + $0x344] ss:$16 sps:$4 sm:$0xff]  }
 0x15e   :  { %v535_v19 = vpop.f32.mrb[0].mxu0 }
 0x15f   :  { %v536_v20 = vadd.f32 %v535_v19, %v484_v17  ;;  %v537_v21 = vpop.f32.mrb[1].mxu0  ;;  %v2455_v17 = vld [vmem:[#allocation7 + $0x34c] ss:$16 sps:$4 sm:$0xff]   ;;  %v2453_v19 = vld [vmem:[#allocation7 + $0x348] ss:$16 sps:$4 sm:$0xff]  }
 0x160   :  { %v538_v22 = vadd.f32 %v537_v21, %v488_v18  ;;  %v539_v23 = vpop.f32.mrb[2].mxu0  ;;  %v2768_v47 = vpop.f32.mrb[0].mxu1  ;;  %v2450_v18 = vld [vmem:[#allocation7 + $0x340] ss:$16 sps:$4 sm:$0xff]   ;;  %v2461_v21 = vld [vmem:[#allocation7 + $0x36c] ss:$16 sps:$4 sm:$0xff]  }
 0x161   :  { %v583_v24 = vmax.f32 %v536_v20, 0.0  ;;  %v540_v25 = vpop.f32.mrb[3].mxu0  ;;  %v578_v50 = vpop.f32.mrb[1].mxu1  ;;  %v2458_v20 = vld [vmem:[#allocation7 + $0x364] ss:$16 sps:$4 sm:$0xff]  }
 0x162   :  { %v584_v26 = vmax.f32 %v538_v22, 0.0  ;;  %v579_v53 = vadd.f32 %v578_v50, %v496_v46  ;;  %v580_v54 = vpop.f32.mrb[2].mxu1  ;;  %v2456_v22 = vld [vmem:[#allocation7 + $0x360] ss:$16 sps:$4 sm:$0xff]   ;;  %v2459_v23 = vld [vmem:[#allocation7 + $0x368] ss:$16 sps:$4 sm:$0xff]  }
 0x163   :  { %v587_v30 = vpack.c.bf16 %v583_v24, %v583_v24  ;;  %v581_v56 = vpop.f32.mrb[3].mxu1  ;;  %v2464_v24 = vld [vmem:[#allocation7 + $0x384] ss:$16 sps:$4 sm:$0xff]   ;;  %v2467_v25 = vld [vmem:[#allocation7 + $0x38c] ss:$16 sps:$4 sm:$0xff]  }
 0x164   :  { %v588_v27 = vpack.c.bf16 %v584_v26, %v584_v26  ;;  %v586_v57 = vmax.f32 %v579_v53, 0.0  ;;  %v2462_v26 = vld [vmem:[#allocation7 + $0x380] ss:$16 sps:$4 sm:$0xff]   ;;  %v2491_v50 = vld [vmem:[#allocation8 + $0xc8] sm:$0xff]  }
 0x165   :  { %v2488_v46 = vld [vmem:[#allocation8] sm:$0xff]   ;;  %v2494_v53 = vld [vmem:[#allocation8 + $0x50] sm:$0xff]  }
 0x166   :  { %1413 = vmatprep.mubr.bf16.mxu0 %v588_v27  ;;  %1495 = vmatprep.mubr.bf16.mxu1 %v588_v27  ;;  %v590_v62 = vpack.c.bf16 %v586_v57, %v586_v57  ;;  %v2465_v27 = vld [vmem:[#allocation7 + $0x388] ss:$16 sps:$4 sm:$0xff]   ;;  %v2495_v54 = vld [vmem:[#allocation8 + $0xd0] sm:$0xff]  }
 0x167   :  { %1414 = vmatmul.mubr.bf16.vlgmr.msra.gmra.mrb[4].mxu0 %v587_v30  ;;  %1496 = vmatmul.mubr.bf16.vlgmr.msra.gmra.mrb[4].mxu1 %v587_v30  ;;  %v2473_v30 = vld [vmem:[#allocation7 + $0x3ac] ss:$16 sps:$4 sm:$0xff]   ;;  %v2496_v56 = vld [vmem:[#allocation8 + $0x10] sm:$0xff]  }
 0x168   :  { %1423 = vmatpush1.bf16.msra.mxu0 %v2390_v28  ;;  %1505 = vmatpush1.bf16.msra.mxu1 %v2393_v29  ;;  %v491_v28 = vsub.s32 2, %v2741_v11  ;;  %v2470_v29 = vld [vmem:[#allocation7 + $0x3a4] ss:$16 sps:$4 sm:$0xff]  }
 0x169   :  { %1424 = vmatprep.subr.bf16.mxu0 %v2398_v31  ;;  %1506 = vmatprep.subr.bf16.mxu1 %v2401_v32  ;;  %v2468_v31 = vld [vmem:[#allocation7 + $0x3a0] ss:$16 sps:$4 sm:$0xff]   ;;  %v2471_v32 = vld [vmem:[#allocation7 + $0x3a8] ss:$16 sps:$4 sm:$0xff]  }
 0x16a   :  { %1454 = vmatprep.mubr.bf16.mxu0 %v590_v62  ;;  %1536 = vmatprep.mubr.bf16.mxu1 %v590_v62  ;;  %v2497_v57 = vld [vmem:[#allocation8 + $0x90] sm:$0xff]   ;;  %v2502_v62 = vld [vmem:[#allocation8 + $0x60] sm:$0xff]  }
 0x16c   :  { %1425 = vmatpush1.bf16.msra.mxu0 %v2396_v33  ;;  %1507 = vmatpush1.bf16.msra.mxu1 %v2399_v34  ;;  %v492_v33 = vrot.slane %v2758_v16, %v491_v28  ;;  %v2476_v34 = vld [vmem:[#allocation7 + $0x3c4] ss:$16 sps:$4 sm:$0xff]  }
 0x16d   :  { %1426 = vmatprep.subr.bf16.mxu0 %v2404_v35  ;;  %1508 = vmatprep.subr.bf16.mxu1 %v2407_v36  ;;  %v2479_v35 = vld [vmem:[#allocation7 + $0x3cc] ss:$16 sps:$4 sm:$0xff]   ;;  %v2474_v36 = vld [vmem:[#allocation7 + $0x3c0] ss:$16 sps:$4 sm:$0xff]  }
 0x16e   :  { %v2486_v16 = vld [vmem:[#allocation8 + $0x40] sm:$0xff]  }
 0x170   :  { %1427 = vmatpush1.bf16.msra.mxu0 %v2402_v37  ;;  %1509 = vmatpush1.bf16.msra.mxu1 %v2405_v38  ;;  %v2477_v37 = vld [vmem:[#allocation7 + $0x3c8] ss:$16 sps:$4 sm:$0xff]   ;;  %v577_v38 = vadd.f32 %v2768_v47, %v492_v33 }
 0x171   :  { %1428 = vmatprep.subr.bf16.mxu0 %v2410_v39  ;;  %1510 = vmatprep.subr.bf16.mxu1 %v2413_v40  ;;  %v2482_v39 = vld [vmem:[#allocation7 + $0x3e4] ss:$16 sps:$4 sm:$0xff]   ;;  %v2485_v40 = vld [vmem:[#allocation7 + $0x3ec] ss:$16 sps:$4 sm:$0xff]  }
 0x172   :  { %v2490_v47 = vld [vmem:[#allocation8 + $0x48] sm:$0xff]  }
 0x174   :  { %1429 = vmatpush1.bf16.msra.mxu0 %v2408_v42  ;;  %1511 = vmatpush1.bf16.msra.mxu1 %v2411_v43  ;;  %v2480_v42 = vld [vmem:[#allocation7 + $0x3e0] ss:$16 sps:$4 sm:$0xff]   ;;  %v2483_v43 = vld [vmem:[#allocation7 + $0x3e8] ss:$16 sps:$4 sm:$0xff]  }
 0x175   :  { %1430 = vmatprep.subr.bf16.mxu0 %v2416_v44  ;;  %1512 = vmatprep.subr.bf16.mxu1 %v2419_v45  ;;  %v585_v44 = vmax.f32 %v577_v38, 0.0  ;;  %v2487_v45 = vld [vmem:[#allocation8 + $0xc0] sm:$0xff]  }
 0x178   :  { %1431 = vmatpush1.bf16.msra.mxu0 %v2414_v48  ;;  %1513 = vmatpush1.bf16.msra.mxu1 %v2417_v49  ;;  %v2489_v48 = vld [vmem:[#allocation8 + $0x80] sm:$0xff]   ;;  %v589_v49 = vpack.c.bf16 %v585_v44, %v585_v44 }
 0x179   :  { %1432 = vmatprep.subr.bf16.mxu0 %v2422_v51  ;;  %1514 = vmatprep.subr.bf16.mxu1 %v2425_v52  ;;  %v2492_v51 = vld [vmem:[#allocation8 + $0x8] sm:$0xff]  }
 0x17a   :  { %v2493_v52 = vld [vmem:[#allocation8 + $0x88] sm:$0xff]  }
 0x17c   :  { %1433 = vmatpush1.bf16.msra.mxu0 %v2420_v58  ;;  %1515 = vmatpush1.bf16.msra.mxu1 %v2423_v59  ;;  %v2498_v58 = vld [vmem:[#allocation8 + $0x58] sm:$0xff]  }
 0x17d   :  { %1434 = vmatprep.subr.bf16.mxu0 %v2428_v60  ;;  %1516 = vmatprep.subr.bf16.mxu1 %v2431_v61  ;;  %v2499_v59 = vld [vmem:[#allocation8 + $0xd8] sm:$0xff]  }
 0x17e   :  { %v2500_v60 = vld [vmem:[#allocation8 + $0x18] sm:$0xff]  }
 0x17f   :  { %v2501_v61 = vld [vmem:[#allocation8 + $0x98] sm:$0xff]  }
 0x180   :  { %1435 = vmatpush1.bf16.msra.mxu0 %v2426_v63  ;;  %1517 = vmatpush1.bf16.msra.mxu1 %v2429_v0  ;;  %v2503_v63 = vld [vmem:[#allocation8 + $0xe0] sm:$0xff]  }
 0x181   :  { %1436 = vmatprep.subr.bf16.mxu0 %v2434_v1  ;;  %1518 = vmatprep.subr.bf16.mxu1 %v2437_v2  ;;  %v2504_v0 = vld [vmem:[#allocation8 + $0x20] sm:$0xff]   ;;  %v2506_v2 = vld [vmem:[#allocation8 + $0x68] sm:$0xff]  }
 0x182   :  { %v2505_v1 = vld [vmem:[#allocation8 + $0xa0] sm:$0xff]  }
 0x184   :  { %1437 = vmatpush1.bf16.msra.mxu0 %v2432_v3  ;;  %1519 = vmatpush1.bf16.msra.mxu1 %v2435_v4  ;;  %v2507_v3 = vld [vmem:[#allocation8 + $0xe8] sm:$0xff]  }
 0x185   :  { %1438 = vmatprep.subr.bf16.mxu0 %v2440_v5  ;;  %1520 = vmatprep.subr.bf16.mxu1 %v2443_v6  ;;  %v2508_v4 = vld [vmem:[#allocation8 + $0x28] sm:$0xff]   ;;  %v2510_v6 = vld [vmem:[#allocation8 + $0x70] sm:$0xff]  }
 0x186   :  { %v2509_v5 = vld [vmem:[#allocation8 + $0xa8] sm:$0xff]  }
 0x188   :  { %1439 = vmatpush1.bf16.msra.mxu0 %v2438_v7  ;;  %1521 = vmatpush1.bf16.msra.mxu1 %v2441_v8  ;;  %v2511_v7 = vld [vmem:[#allocation8 + $0xf0] sm:$0xff]  }
 0x189   :  { %1440 = vmatprep.subr.bf16.mxu0 %v2446_v9  ;;  %1522 = vmatprep.subr.bf16.mxu1 %v2449_v10  ;;  %v2512_v8 = vld [vmem:[#allocation8 + $0x30] sm:$0xff]   ;;  %v2514_v10 = vld [vmem:[#allocation8 + $0x78] sm:$0xff]  }
 0x18a   :  { %v2513_v9 = vld [vmem:[#allocation8 + $0xb0] sm:$0xff]  }
 0x18c   :  { %1441 = vmatpush1.bf16.msra.mxu0 %v2444_v12  ;;  %1523 = vmatpush1.bf16.msra.mxu1 %v2447_v13  ;;  %v2515_v12 = vld [vmem:[#allocation8 + $0xf8] sm:$0xff]  }
 0x18d   :  { %1442 = vmatprep.subr.bf16.mxu0 %v2452_v15  ;;  %1524 = vmatprep.subr.bf16.mxu1 %v2455_v17  ;;  %v2516_v13 = vld [vmem:[#allocation8 + $0x38] sm:$0xff]   ;;  %v719_v17 = vld [vmem:[%s2803_s4] sm:$0xf] }
 0x18e   :  { %v2517_v15 = vld [vmem:[#allocation8 + $0xb8] sm:$0xff]  }
 0x190   :  { %1443 = vmatpush1.bf16.msra.mxu0 %v2450_v18  ;;  %1525 = vmatpush1.bf16.msra.mxu1 %v2453_v19  ;;  %v1364_v18 = vrot.slane %v719_v17, %v2751_v55  ;;  %v1372_v19 = vrot.slane %v719_v17, %v491_v28 }
 0x191   :  { %1444 = vmatprep.subr.bf16.mxu0 %v2458_v20  ;;  %1526 = vmatprep.subr.bf16.mxu1 %v2461_v21  ;;  %v1368_v20 = vrot.slane %v719_v17, %v2744_v14  ;;  %v1376_v21 = vrot.slane %v719_v17, %v495_v41 }
 0x194   :  { %1445 = vmatpush1.bf16.msra.mxu0 %v2456_v22  ;;  %1527 = vmatpush1.bf16.msra.mxu1 %v2459_v23 }
 0x195   :  { %1446 = vmatprep.subr.bf16.mxu0 %v2464_v24  ;;  %1528 = vmatprep.subr.bf16.mxu1 %v2467_v25 }
 0x198   :  { %1447 = vmatpush1.bf16.msra.mxu0 %v2462_v26  ;;  %1529 = vmatpush1.bf16.msra.mxu1 %v2465_v27 }
 0x199   :  { %1448 = vmatprep.subr.bf16.mxu0 %v2470_v29  ;;  %1530 = vmatprep.subr.bf16.mxu1 %v2473_v30 }
 0x19c   :  { %1449 = vmatpush1.bf16.msra.mxu0 %v2468_v31  ;;  %1531 = vmatpush1.bf16.msra.mxu1 %v2471_v32 }
 0x19d   :  { %1450 = vmatprep.subr.bf16.mxu0 %v2476_v34  ;;  %1532 = vmatprep.subr.bf16.mxu1 %v2479_v35 }
 0x1a0   :  { %1451 = vmatpush1.bf16.msra.mxu0 %v2474_v36  ;;  %1533 = vmatpush1.bf16.msra.mxu1 %v2477_v37 }
 0x1a1   :  { %1452 = vmatprep.subr.bf16.mxu0 %v2482_v39  ;;  %1534 = vmatprep.subr.bf16.mxu1 %v2485_v40  ;;  %v1617_v40 = vld [vmem:[%s2805_s6] sm:$0x1] }
 0x1a4   :  { %1453 = vmatpush1.bf16.msra.mxu0 %v2480_v42  ;;  %1535 = vmatpush1.bf16.msra.mxu1 %v2483_v43 }
 0x1a5   :  { %2133 = vmatprep.subr.bf16.mxu0 %v2486_v16  ;;  %2155 = vmatprep.subr.bf16.mxu1 %v2487_v45 }
 0x1a7   :  { %1455 = vmatmul.mubr.bf16.vlgmr.msra.gmra.mrb[4].mxu0 %v589_v49  ;;  %1537 = vmatmul.mubr.bf16.vlgmr.msra.gmra.mrb[4].mxu1 %v589_v49 }
 0x1a8   :  { %2134 = vmatpush3.bf16.msra.mxu0 %v2488_v46  ;;  %2156 = vmatpush3.bf16.msra.mxu1 %v2489_v48 }
 0x1a9   :  { %2135 = vmatprep.subr.bf16.mxu0 %v2490_v47  ;;  %2157 = vmatprep.subr.bf16.mxu1 %v2491_v50 }
 0x1ac   :  { %2136 = vmatpush3.bf16.msra.mxu0 %v2492_v51  ;;  %2158 = vmatpush3.bf16.msra.mxu1 %v2493_v52 }
 0x1ad   :  { %2137 = vmatprep.subr.bf16.mxu0 %v2494_v53  ;;  %2159 = vmatprep.subr.bf16.mxu1 %v2495_v54 }
 0x1b0   :  { %2138 = vmatpush3.bf16.msra.mxu0 %v2496_v56  ;;  %2160 = vmatpush3.bf16.msra.mxu1 %v2497_v57 }
 0x1b1   :  { %2139 = vmatprep.subr.bf16.mxu0 %v2498_v58  ;;  %2161 = vmatprep.subr.bf16.mxu1 %v2499_v59 }
 0x1b4   :  { %2140 = vmatpush3.bf16.msra.mxu0 %v2500_v60  ;;  %2162 = vmatpush3.bf16.msra.mxu1 %v2501_v61 }
 0x1b5   :  { %2141 = vmatprep.subr.bf16.mxu0 %v2502_v62  ;;  %2163 = vmatprep.subr.bf16.mxu1 %v2503_v63 }
 0x1b8   :  { %2142 = vmatpush3.bf16.msra.mxu0 %v2504_v0  ;;  %2164 = vmatpush3.bf16.msra.mxu1 %v2505_v1 }
 0x1b9   :  { %2143 = vmatprep.subr.bf16.mxu0 %v2506_v2  ;;  %2165 = vmatprep.subr.bf16.mxu1 %v2507_v3 }
 0x1bc   :  { %2144 = vmatpush3.bf16.msra.mxu0 %v2508_v4  ;;  %2166 = vmatpush3.bf16.msra.mxu1 %v2509_v5 }
 0x1bd   :  { %2145 = vmatprep.subr.bf16.mxu0 %v2510_v6  ;;  %2167 = vmatprep.subr.bf16.mxu1 %v2511_v7 }
 0x1c0   :  { %2146 = vmatpush3.bf16.msra.mxu0 %v2512_v8  ;;  %2168 = vmatpush3.bf16.msra.mxu1 %v2513_v9 }
 0x1c1   :  { %2147 = vmatprep.subr.bf16.mxu0 %v2514_v10  ;;  %2169 = vmatprep.subr.bf16.mxu1 %v2515_v12 }
 0x1c4   :  { %2148 = vmatpush3.bf16.msra.mxu0 %v2516_v13  ;;  %2170 = vmatpush3.bf16.msra.mxu1 %v2517_v15 }
 0x27a   :  { %v1456_v22 = vpop.f32.mrb[4].mxu0  ;;  %v1538_v23 = vpop.f32.mrb[4].mxu1 }
 0x27b   :  { %v2177_v24 = vadd.f32 %v1456_v22, %v1364_v18  ;;  %v2179_v25 = vadd.f32 %v1538_v23, %v1372_v19  ;;  %v1458_v26 = vpop.f32.mrb[5].mxu0  ;;  %v1540_v27 = vpop.f32.mrb[5].mxu1 }
 0x27c   :  { %v2178_v29 = vadd.f32 %v1458_v26, %v1368_v20  ;;  %v2180_v30 = vadd.f32 %v1540_v27, %v1376_v21  ;;  %v1460_v31 = vpop.f32.mrb[6].mxu0  ;;  %v1542_v32 = vpop.f32.mrb[6].mxu1 }
 0x27d   :  { %v1545_v33 = vmax.f32 %v2177_v24, 0.0  ;;  %v1547_v55 = vmax.f32 %v2179_v25, 0.0  ;;  %v1461_v34 = vpop.f32.mrb[7].mxu0  ;;  %v1543_v35 = vpop.f32.mrb[7].mxu1 }
 0x27e   :  { %v1546_v28 = vmax.f32 %v2178_v29, 0.0  ;;  %v1548_v36 = vmax.f32 %v2180_v30, 0.0 }
 0x27f   :  { %v1549_v11 = vpack.c.bf16 %v1545_v33, %v1545_v33  ;;  %v1551_v41 = vpack.c.bf16 %v1547_v55, %v1547_v55 }
 0x280   :  { %v1550_v14 = vpack.c.bf16 %v1546_v28, %v1546_v28  ;;  %v1552_v37 = vpack.c.bf16 %v1548_v36, %v1548_v36 }
 0x282   :  { %1842 = vmatprep.mubr.bf16.mxu0 %v1550_v14  ;;  %1882 = vmatprep.mubr.bf16.mxu1 %v1552_v37 }
 0x283   :  { %1843 = vmatmul.mubr.bf16.vlgmr.msra.gmra.mrb[8].mxu0 %v1549_v11  ;;  %1883 = vmatmul.mubr.bf16.vlgmr.msra.gmra.mrb[8].mxu1 %v1551_v41 }
 0x356   :  { %v2149_v38 = vpop.f32.mrb[8].mxu0  ;;  %v2171_v39 = vpop.f32.mrb[8].mxu1 }
 0x357   :  { %v2150_v42 = vpop.f32.mrb[9].mxu0  ;;  %v2172_v43 = vpop.f32.mrb[9].mxu1 }
 0x358   :  { %v2151_v44 = vadd.f32 %v2150_v42, %v2149_v38  ;;  %v2173_v16 = vadd.f32 %v2172_v43, %v2171_v39  ;;  %v2152_v45 = vpop.f32.mrb[10].mxu0  ;;  %v2174_v46 = vpop.f32.mrb[10].mxu1 }
 0x359   :  { %v2153_v48 = vpop.f32.mrb[11].mxu0  ;;  %v2175_v49 = vpop.f32.mrb[11].mxu1 }
 0x35a   :  { %v1845_v47 = vadd.f32 %v2151_v44, %v1617_v40 }
 0x35c   :  { %v1885_v50 = vadd.f32 %v2173_v16, %v1845_v47 }
 0x35e   :  { %2518 = vtanh.f32 %v1885_v50 }
 0x368   :  { %v2519_v51 = vpop.eup %2518 }
 0x369   :  { %1891 = vst [vmem:[#allocation10] sm:$0x1] %v2519_v51 }
 0x36a   :  { %2619 = shalt.err (!%p2616_p8)
}
 0x36b   :  { %s2620_s13 = scalar_lea.hbm %s2806_s7, 16 }
 0x36c   :  { %p2621_p9 = scmp.ne.s32.totalorder %s2806_s7, %s2620_s13  ;;  %p2624_p10 = scmp.lt.u32.totalorder %s2620_s13, %s2806_s7 }
 0x36e   :  { %p2626_p11 = pnand %p2624_p10, %p2621_p9 }
 0x370   :  { %2629 = shalt.err (!%p2626_p11)
}
 0x371   :  { %1901 = dma.vmem_to_hbm [thread:$0]  %s1899_s30, 16, %s2806_s7, [#allocation4]  }
 0x372   :  { %2636 = dma.done.wait [#allocation4], 16  }
 0x373   :  { %2637 = vsyncadd [#allocation4], 4294967280 }
 0x374   :  { %1905 = vsyncpa [#allocation3], 1 }
 0x375   :  { %1906 = vsyncpa [#allocation6], 1 }
 0x376   :  { %1907 = vsyncpa [#allocation9], 1 }
 0x377   :  { %1908 = vsyncpa [#allocation4], 1 }

</bundles_post_ra>
